<compile_context>
chip_gen: v7x
topology: tpu7x:2x2x1
jax: 0.10.0
libtpu: 0.0.40
codegen_flags: <defaults>
</compile_context>

<pallas_src>
import jax
import jax.numpy as jnp
from jax import lax
from jax.experimental import pallas as pl
from jax.experimental.pallas import tpu as pltpu

LN_EPS = 1e-5  # PyTorch nn.LayerNorm default


def _gelu_exact(x):
    # F.gelu default = exact erf formulation (kept for bit-level semantics).
    return 0.5 * x * (1.0 + lax.erf(x * (1.0 / jnp.sqrt(2.0).astype(x.dtype))))


def mixer_block_kernel(
    x_ref,                   # (Bt, P, C) f32
    ln1_w_ref, ln1_b_ref,    # (P, C) f32
    w1a_ref, b1a_ref,        # (P, d_s) bf16, (d_s, 1) f32   token-mix fc1
    w1b_ref, b1b_ref,        # (d_s, P) bf16, (P, 1) f32     token-mix fc2
    ln2_w_ref, ln2_b_ref,    # (P, C) f32
    w2a_ref, b2a_ref,        # (C, d_c) bf16, (1, d_c) f32   channel-mix fc1
    w2b_ref, b2b_ref,        # (d_c, C) bf16, (1, C) f32     channel-mix fc2
    o_ref,                   # (Bt, P, C) f32
):
    bt, P, C = x_ref.shape
    inv_n = jnp.float32(1.0 / (P * C))

    x = x_ref[...]                                           # (Bt, P, C)

    # ---- LayerNorm 1 over (P, C) jointly, per sample; fused stats ----
    s1 = jnp.sum(jnp.sum(x, axis=2, keepdims=True), axis=1, keepdims=True) * inv_n
    s2 = jnp.sum(jnp.sum(x * x, axis=2, keepdims=True), axis=1, keepdims=True) * inv_n
    var1 = jnp.maximum(s2 - s1 * s1, 0.0)
    xn = ((x - s1) * lax.rsqrt(var1 + LN_EPS)) * ln1_w_ref[...] + ln1_b_ref[...]
    xn_bf = xn.astype(jnp.bfloat16)

    w1a = w1a_ref[...]                                       # bf16 (P, d_s)
    w1b = w1b_ref[...]                                       # bf16 (d_s, P)
    b1a = b1a_ref[...]                                       # f32  (d_s, 1)
    b1b = b1b_ref[...]                                       # f32  (P, 1)

    # ---- token-mixing MLP (transpose-free dot_generals), per sample ----
    # o_ref doubles as the VMEM stash for skip2 so residuals don't stay live
    # across the matmuls.
    for i in range(bt):
        xi = xn_bf[i]                                        # (P, C) bf16
        # h[s, c] = sum_p w1a[p, s] * xn[i, p, c]   (lhs-transposed contraction)
        h = lax.dot_general(w1a, xi, (((0,), (0,)), ((), ())),
                            preferred_element_type=jnp.float32)      # (d_s, C)
        h = _gelu_exact(h + b1a)
        # tok[p, c] = sum_s w1b[s, p] * h[s, c]
        tok = lax.dot_general(w1b, h.astype(jnp.bfloat16),
                              (((0,), (0,)), ((), ())),
                              preferred_element_type=jnp.float32)    # (P, C)
        o_ref[i] = tok + b1b + x_ref[i]                      # skip1 re-read from VMEM

    # ---- LayerNorm 2 over (P, C) jointly; fused stats ----
    y = o_ref[...]                                           # skip2 (Bt, P, C)
    t1 = jnp.sum(jnp.sum(y, axis=2, keepdims=True), axis=1, keepdims=True) * inv_n
    t2 = jnp.sum(jnp.sum(y * y, axis=2, keepdims=True), axis=1, keepdims=True) * inv_n
    var2 = jnp.maximum(t2 - t1 * t1, 0.0)
    yn = ((y - t1) * lax.rsqrt(var2 + LN_EPS)) * ln2_w_ref[...] + ln2_b_ref[...]

    # ---- channel-mixing MLP on the flattened (Bt*P, C) slab ----
    yn2 = yn.reshape(bt * P, C).astype(jnp.bfloat16)
    h2 = lax.dot_general(yn2, w2a_ref[...], (((1,), (0,)), ((), ())),
                         preferred_element_type=jnp.float32)         # (Bt*P, d_c)
    h2 = _gelu_exact(h2 + b2a_ref[...])
    z = lax.dot_general(h2.astype(jnp.bfloat16), w2b_ref[...],
                        (((1,), (0,)), ((), ())),
                        preferred_element_type=jnp.float32)          # (Bt*P, C)
    z = z + b2b_ref[...]

    o_ref[...] = z.reshape(bt, P, C) + o_ref[...]            # + skip2 (from VMEM)


def _choose_bt(B, P, C, d_s, d_c, budget_bytes=40 * 2**20):
    """Largest divisor of B that fits a VMEM budget, keeps >=2 grid steps,
    and bounds unrolling of the per-sample token-mix loop."""
    per_sample = P * C * 4 * 10 + P * max(d_s, d_c) * 4 * 2
    cap = max(1, budget_bytes // max(per_sample, 1))
    cap = min(cap, 8)                       # bound in-kernel unrolling
    if B >= 2:
        cap = min(cap, B // 2)              # >=2 grid steps for v7x megacore
    cap = max(cap, 1)
    bt = 1
    for d in range(1, min(B, cap) + 1):
        if B % d == 0:
            bt = d
    return bt


def _vmem_limit_bytes(bt, P, C, d_s, d_c):
    act = bt * P * C * 4                                     # one f32 activation block
    io_blocks = act * 2 * 2                                  # x + out, double-buffered
    weights = (4 * P * C * 4                                 # ln gammas/betas (f32)
               + 2 * (P * d_s + d_s * P + C * d_c + d_c * C)  # bf16 matmul weights
               + 4 * (d_s + P + d_c + C)) * 2                # f32 biases, double-buffered
    work = act * 6 + bt * P * max(d_s, d_c) * 4 * 2          # in-kernel temporaries
    est = io_blocks + weights + work
    # floor at 32 MiB (>= default scoped limits), cap at 64 MiB (v7x physical)
    return int(min(64 * 2**20, max(32 * 2**20, (est * 3) // 2)))


def mixer_block(x, params, *, bt=None):
    """x: (B, P, C) float32. params: dict of deterministic weights (f32)."""
    B, P, C = x.shape
    d_s = params["w1a"].shape[1]
    d_c = params["w2a"].shape[1]

    if bt is None:
        bt = _choose_bt(B, P, C, d_s, d_c)
    assert B % bt == 0, (B, bt)
    grid = (B // bt,)

    # Pre-cast MXU weights to bf16 (halves their DMA/VMEM); LN params & biases stay f32.
    w1a = params["w1a"].astype(jnp.bfloat16)                 # (P, d_s)
    w1b = params["w1b"].astype(jnp.bfloat16)                 # (d_s, P)
    w2a = params["w2a"].astype(jnp.bfloat16)                 # (C, d_c)
    w2b = params["w2b"].astype(jnp.bfloat16)                 # (d_c, C)
    b1a = params["b1a"].reshape(d_s, 1)                      # per-d_s bias for (d_s, C)
    b1b = params["b1b"].reshape(P, 1)                        # per-patch bias for (P, C)

    const = lambda shape: pl.BlockSpec(shape, lambda g: (0, 0))

    # TODO(synk): for production shapes with C < 128 the lane axis is sparse;
    # folding P into the lane axis in the wrapper would improve store density.
    return pl.pallas_call(
        mixer_block_kernel,
        out_shape=jax.ShapeDtypeStruct((B, P, C), jnp.float32),
        grid_spec=pltpu.PrefetchScalarGridSpec(
            num_scalar_prefetch=0,
            grid=grid,
            in_specs=[
                pl.BlockSpec((bt, P, C), lambda g: (g, 0, 0)),   # x
                const((P, C)), const((P, C)),                    # ln1 w, b
                const((P, d_s)), const((d_s, 1)),                # mlp1 fc1
                const((d_s, P)), const((P, 1)),                  # mlp1 fc2
                const((P, C)), const((P, C)),                    # ln2 w, b
                const((C, d_c)), const((1, d_c)),                # mlp2 fc1
                const((d_c, C)), const((1, C)),                  # mlp2 fc2
            ],
            out_specs=pl.BlockSpec((bt, P, C), lambda g: (g, 0, 0)),
        ),
        compiler_params=pltpu.CompilerParams(
            dimension_semantics=("parallel",),
            vmem_limit_bytes=_vmem_limit_bytes(bt, P, C, d_s, d_c),
        ),
    )(
        x,
        params["ln1_w"], params["ln1_b"],
        w1a, b1a,
        w1b, b1b,
        params["ln2_w"], params["ln2_b"],
        w2a, params["b2a"],
        w2b, params["b2b"],
    )


def make_params(key, patches, channels, d_s, d_c):
    """Deterministic synthetic parameters (shapes match the PyTorch __init__)."""
    ks = jax.random.split(key, 8)
    scale = 0.05
    # Weights stored in (in, out) layout for the kernel (PyTorch is (out, in)).
    return {
        "ln1_w": jnp.ones((patches, channels), jnp.float32),
        "ln1_b": jnp.zeros((patches, channels), jnp.float32),
        "w1a": scale * jax.random.normal(ks[0], (patches, d_s), jnp.float32),
        "b1a": scale * jax.random.normal(ks[1], (1, d_s), jnp.float32),
        "w1b": scale * jax.random.normal(ks[2], (d_s, patches), jnp.float32),
        "b1b": scale * jax.random.normal(ks[3], (1, patches), jnp.float32),
        "ln2_w": jnp.ones((patches, channels), jnp.float32),
        "ln2_b": jnp.zeros((patches, channels), jnp.float32),
        "w2a": scale * jax.random.normal(ks[4], (channels, d_c), jnp.float32),
        "b2a": scale * jax.random.normal(ks[5], (1, d_c), jnp.float32),
        "w2b": scale * jax.random.normal(ks[6], (d_c, channels), jnp.float32),
        "b2b": scale * jax.random.normal(ks[7], (1, channels), jnp.float32),
    }


def mixer_block_ref(x, p):
    """Pure-JAX f32 reference matching the PyTorch forward."""
    def ln(v, w, b):
        m = jnp.mean(v, axis=(1, 2), keepdims=True)
        s = jnp.mean((v - m) ** 2, axis=(1, 2), keepdims=True)
        return (v - m) / jnp.sqrt(s + LN_EPS) * w + b

    def gelu(v):
        return 0.5 * v * (1.0 + lax.erf(v / jnp.sqrt(2.0)))

    skip1 = x
    y = ln(x, p["ln1_w"], p["ln1_b"])
    y = jnp.swapaxes(y, 1, 2)                       # (B, C, P)
    y = gelu(y @ p["w1a"] + p["b1a"]) @ p["w1b"] + p["b1b"]
    y = jnp.swapaxes(y, 1, 2) + skip1
    skip2 = y
    z = ln(y, p["ln2_w"], p["ln2_b"])
    z = gelu(z @ p["w2a"] + p["b2a"]) @ p["w2b"] + p["b2b"]
    return z + skip2


if __name__ == "__main__":
    B, patches, channels, d_s, d_c = 2, 8, 16, 32, 32

    key = jax.random.PRNGKey(0)
    kx, kp = jax.random.split(key)
    x = jax.random.normal(kx, (B, patches, channels), jnp.float32)
    params = make_params(kp, patches, channels, d_s, d_c)

    out = jax.block_until_ready(mixer_block(x, params))
    ref = mixer_block_ref(x, params)

    assert out.shape == (B, patches, channels)
    # Tolerance loosened slightly for bf16 MXU operands (f32 accumulation kept).
    assert jnp.allclose(out, ref, atol=2e-2, rtol=2e-2), float(jnp.max(jnp.abs(out - ref)))

    print("KERNEL_OK")
</pallas_src>

<mosaic_0001>
module attributes {stable_mosaic.version = 11 : i64} {
  func.func @mixer_block_kernel(%arg0: i32, %arg1: memref<1x8x16xf32, #tpu.memory_space<vmem>>, %arg2: memref<8x16xf32, #tpu.memory_space<vmem>>, %arg3: memref<8x16xf32, #tpu.memory_space<vmem>>, %arg4: memref<8x32xbf16, #tpu.memory_space<vmem>>, %arg5: memref<32x1xf32, #tpu.memory_space<vmem>>, %arg6: memref<32x8xbf16, #tpu.memory_space<vmem>>, %arg7: memref<8x1xf32, #tpu.memory_space<vmem>>, %arg8: memref<8x16xf32, #tpu.memory_space<vmem>>, %arg9: memref<8x16xf32, #tpu.memory_space<vmem>>, %arg10: memref<16x32xbf16, #tpu.memory_space<vmem>>, %arg11: memref<1x32xf32, #tpu.memory_space<vmem>>, %arg12: memref<32x16xbf16, #tpu.memory_space<vmem>>, %arg13: memref<1x16xf32, #tpu.memory_space<vmem>>, %arg14: memref<1x8x16xf32, #tpu.memory_space<vmem>>) attributes {dimension_semantics = [#tpu.dimension_semantics<parallel>], iteration_bounds = array<i64: 2>, scalar_prefetch = 0 : i64, scratch_operands = 0 : i64, tpu.core_type = #tpu.core_type<tc>, window_params = [{transform_indices = @transform_0, window_bounds = array<i64: 1, 8, 16>}, {pipeline_mode = #tpu.pipeline_mode<synchronous>, transform_indices = @transform_1, window_bounds = array<i64: 8, 16>}, {pipeline_mode = #tpu.pipeline_mode<synchronous>, transform_indices = @transform_2, window_bounds = array<i64: 8, 16>}, {pipeline_mode = #tpu.pipeline_mode<synchronous>, transform_indices = @transform_3, window_bounds = array<i64: 8, 32>}, {pipeline_mode = #tpu.pipeline_mode<synchronous>, transform_indices = @transform_4, window_bounds = array<i64: 32, 1>}, {pipeline_mode = #tpu.pipeline_mode<synchronous>, transform_indices = @transform_5, window_bounds = array<i64: 32, 8>}, {pipeline_mode = #tpu.pipeline_mode<synchronous>, transform_indices = @transform_6, window_bounds = array<i64: 8, 1>}, {pipeline_mode = #tpu.pipeline_mode<synchronous>, transform_indices = @transform_7, window_bounds = array<i64: 8, 16>}, {pipeline_mode = #tpu.pipeline_mode<synchronous>, transform_indices = @transform_8, window_bounds = array<i64: 8, 16>}, {pipeline_mode = #tpu.pipeline_mode<synchronous>, transform_indices = @transform_9, window_bounds = array<i64: 16, 32>}, {pipeline_mode = #tpu.pipeline_mode<synchronous>, transform_indices = @transform_10, window_bounds = array<i64: 1, 32>}, {pipeline_mode = #tpu.pipeline_mode<synchronous>, transform_indices = @transform_11, window_bounds = array<i64: 32, 16>}, {pipeline_mode = #tpu.pipeline_mode<synchronous>, transform_indices = @transform_12, window_bounds = array<i64: 1, 16>}, {transform_indices = @transform_13, window_bounds = array<i64: 1, 8, 16>}]} {
    %c0 = arith.constant 0 : index
    %c0_0 = arith.constant 0 : index
    %c0_1 = arith.constant 0 : index
    %0 = vector.load %arg1[%c0, %c0_0, %c0_1] : memref<1x8x16xf32, #tpu.memory_space<vmem>>, vector<1x8x16xf32>
    %cst = arith.constant dense<0.000000e+00> : vector<1x8xf32>
    %1 = vector.multi_reduction <add>, %0, %cst [2] : vector<1x8x16xf32> to vector<1x8xf32>
    %2 = vector.shape_cast %1 : vector<1x8xf32> to vector<1x8x1xf32>
    %cst_2 = arith.constant dense<0.000000e+00> : vector<1x1xf32>
    %3 = vector.multi_reduction <add>, %2, %cst_2 [1] : vector<1x8x1xf32> to vector<1x1xf32>
    %4 = vector.shape_cast %3 : vector<1x1xf32> to vector<1x1x1xf32>
    %cst_3 = arith.constant 7.812500e-03 : f32
    %5 = vector.broadcast %cst_3 : f32 to vector<1x1x1xf32>
    %6 = arith.mulf %4, %5 : vector<1x1x1xf32>
    %7 = arith.mulf %0, %0 : vector<1x8x16xf32>
    %cst_4 = arith.constant dense<0.000000e+00> : vector<1x8xf32>
    %8 = vector.multi_reduction <add>, %7, %cst_4 [2] : vector<1x8x16xf32> to vector<1x8xf32>
    %9 = vector.shape_cast %8 : vector<1x8xf32> to vector<1x8x1xf32>
    %cst_5 = arith.constant dense<0.000000e+00> : vector<1x1xf32>
    %10 = vector.multi_reduction <add>, %9, %cst_5 [1] : vector<1x8x1xf32> to vector<1x1xf32>
    %11 = vector.shape_cast %10 : vector<1x1xf32> to vector<1x1x1xf32>
    %cst_6 = arith.constant 7.812500e-03 : f32
    %12 = vector.broadcast %cst_6 : f32 to vector<1x1x1xf32>
    %13 = arith.mulf %11, %12 : vector<1x1x1xf32>
    %14 = arith.mulf %6, %6 : vector<1x1x1xf32>
    %15 = arith.subf %13, %14 : vector<1x1x1xf32>
    %cst_7 = arith.constant 0.000000e+00 : f32
    %16 = vector.broadcast %cst_7 : f32 to vector<1x1x1xf32>
    %17 = arith.maximumf %15, %16 : vector<1x1x1xf32>
    %18 = vector.broadcast %6 : vector<1x1x1xf32> to vector<1x8x16xf32>
    %19 = arith.subf %0, %18 : vector<1x8x16xf32>
    %cst_8 = arith.constant 9.99999974E-6 : f32
    %20 = vector.broadcast %cst_8 : f32 to vector<1x1x1xf32>
    %21 = arith.addf %17, %20 : vector<1x1x1xf32>
    %22 = math.rsqrt %21 : vector<1x1x1xf32>
    %23 = vector.broadcast %22 : vector<1x1x1xf32> to vector<1x8x16xf32>
    %24 = arith.mulf %19, %23 : vector<1x8x16xf32>
    %c0_9 = arith.constant 0 : index
    %c0_10 = arith.constant 0 : index
    %25 = vector.load %arg2[%c0_9, %c0_10] : memref<8x16xf32, #tpu.memory_space<vmem>>, vector<8x16xf32>
    %26 = vector.shape_cast %25 : vector<8x16xf32> to vector<1x8x16xf32>
    %27 = arith.mulf %24, %26 : vector<1x8x16xf32>
    %c0_11 = arith.constant 0 : index
    %c0_12 = arith.constant 0 : index
    %28 = vector.load %arg3[%c0_11, %c0_12] : memref<8x16xf32, #tpu.memory_space<vmem>>, vector<8x16xf32>
    %29 = vector.shape_cast %28 : vector<8x16xf32> to vector<1x8x16xf32>
    %30 = arith.addf %27, %29 : vector<1x8x16xf32>
    %31 = arith.truncf %30 : vector<1x8x16xf32> to vector<1x8x16xbf16>
    %c0_13 = arith.constant 0 : index
    %c0_14 = arith.constant 0 : index
    %32 = vector.load %arg4[%c0_13, %c0_14] : memref<8x32xbf16, #tpu.memory_space<vmem>>, vector<8x32xbf16>
    %c0_15 = arith.constant 0 : index
    %c0_16 = arith.constant 0 : index
    %33 = vector.load %arg6[%c0_15, %c0_16] : memref<32x8xbf16, #tpu.memory_space<vmem>>, vector<32x8xbf16>
    %c0_17 = arith.constant 0 : index
    %c0_18 = arith.constant 0 : index
    %34 = vector.load %arg5[%c0_17, %c0_18] : memref<32x1xf32, #tpu.memory_space<vmem>>, vector<32x1xf32>
    %c0_19 = arith.constant 0 : index
    %c0_20 = arith.constant 0 : index
    %35 = vector.load %arg7[%c0_19, %c0_20] : memref<8x1xf32, #tpu.memory_space<vmem>>, vector<8x1xf32>
    %36 = vector.shape_cast %31 : vector<1x8x16xbf16> to vector<8x16xbf16>
    %cst_21 = arith.constant dense<0.000000e+00> : vector<32x16xf32>
    %37 = tpu.matmul %32, %36, %cst_21 {dimension_numbers = #tpu.dot_dimension_numbers<[0], [0], [1], [1], [0, 1, 1, 1], [], []>} : vector<8x32xbf16>, vector<8x16xbf16>, vector<32x16xf32> -> vector<32x16xf32>
    %38 = vector.broadcast %34 : vector<32x1xf32> to vector<32x16xf32>
    %39 = arith.addf %37, %38 : vector<32x16xf32>
    %cst_22 = arith.constant 5.000000e-01 : f32
    %40 = vector.broadcast %cst_22 : f32 to vector<32x16xf32>
    %41 = arith.mulf %40, %39 : vector<32x16xf32>
    %cst_23 = arith.constant 2.000000e+00 : f32
    %42 = math.sqrt %cst_23 : f32
    %cst_24 = arith.constant 1.000000e+00 : f32
    %43 = arith.divf %cst_24, %42 : f32
    %44 = vector.broadcast %43 : f32 to vector<32x16xf32>
    %45 = arith.mulf %39, %44 : vector<32x16xf32>
    %46 = math.erf %45 : vector<32x16xf32>
    %cst_25 = arith.constant 1.000000e+00 : f32
    %47 = vector.broadcast %cst_25 : f32 to vector<32x16xf32>
    %48 = arith.addf %47, %46 : vector<32x16xf32>
    %49 = arith.mulf %41, %48 : vector<32x16xf32>
    %50 = arith.truncf %49 : vector<32x16xf32> to vector<32x16xbf16>
    %cst_26 = arith.constant dense<0.000000e+00> : vector<8x16xf32>
    %51 = tpu.matmul %33, %50, %cst_26 {dimension_numbers = #tpu.dot_dimension_numbers<[0], [0], [1], [1], [0, 1, 1, 1], [], []>} : vector<32x8xbf16>, vector<32x16xbf16>, vector<8x16xf32> -> vector<8x16xf32>
    %52 = vector.broadcast %35 : vector<8x1xf32> to vector<8x16xf32>
    %53 = arith.addf %51, %52 : vector<8x16xf32>
    %c0_27 = arith.constant 0 : index
    %c0_28 = arith.constant 0 : index
    %c0_29 = arith.constant 0 : index
    %54 = vector.load %arg1[%c0_27, %c0_28, %c0_29] : memref<1x8x16xf32, #tpu.memory_space<vmem>>, vector<1x8x16xf32>
    %55 = vector.shape_cast %54 : vector<1x8x16xf32> to vector<8x16xf32>
    %56 = arith.addf %53, %55 : vector<8x16xf32>
    %c0_30 = arith.constant 0 : index
    %c0_31 = arith.constant 0 : index
    %c0_32 = arith.constant 0 : index
    %57 = vector.load %arg14[%c0_30, %c0_31, %c0_32] : memref<1x8x16xf32, #tpu.memory_space<vmem>>, vector<1x8x16xf32>
    %58 = vector.shape_cast %57 : vector<1x8x16xf32> to vector<8x16xf32>
    %59 = vector.shape_cast %56 : vector<8x16xf32> to vector<1x8x16xf32>
    tpu.vector_store %arg14[%c0_30, %c0_31, %c0_32], %59 {strides = array<i32>} : memref<1x8x16xf32, #tpu.memory_space<vmem>>, vector<1x8x16xf32>,
    %c0_33 = arith.constant 0 : index
    %c0_34 = arith.constant 0 : index
    %c0_35 = arith.constant 0 : index
    %60 = vector.load %arg14[%c0_33, %c0_34, %c0_35] : memref<1x8x16xf32, #tpu.memory_space<vmem>>, vector<1x8x16xf32>
    %cst_36 = arith.constant dense<0.000000e+00> : vector<1x8xf32>
    %61 = vector.multi_reduction <add>, %60, %cst_36 [2] : vector<1x8x16xf32> to vector<1x8xf32>
    %62 = vector.shape_cast %61 : vector<1x8xf32> to vector<1x8x1xf32>
    %cst_37 = arith.constant dense<0.000000e+00> : vector<1x1xf32>
    %63 = vector.multi_reduction <add>, %62, %cst_37 [1] : vector<1x8x1xf32> to vector<1x1xf32>
    %64 = vector.shape_cast %63 : vector<1x1xf32> to vector<1x1x1xf32>
    %cst_38 = arith.constant 7.812500e-03 : f32
    %65 = vector.broadcast %cst_38 : f32 to vector<1x1x1xf32>
    %66 = arith.mulf %64, %65 : vector<1x1x1xf32>
    %67 = arith.mulf %60, %60 : vector<1x8x16xf32>
    %cst_39 = arith.constant dense<0.000000e+00> : vector<1x8xf32>
    %68 = vector.multi_reduction <add>, %67, %cst_39 [2] : vector<1x8x16xf32> to vector<1x8xf32>
    %69 = vector.shape_cast %68 : vector<1x8xf32> to vector<1x8x1xf32>
    %cst_40 = arith.constant dense<0.000000e+00> : vector<1x1xf32>
    %70 = vector.multi_reduction <add>, %69, %cst_40 [1] : vector<1x8x1xf32> to vector<1x1xf32>
    %71 = vector.shape_cast %70 : vector<1x1xf32> to vector<1x1x1xf32>
    %cst_41 = arith.constant 7.812500e-03 : f32
    %72 = vector.broadcast %cst_41 : f32 to vector<1x1x1xf32>
    %73 = arith.mulf %71, %72 : vector<1x1x1xf32>
    %74 = arith.mulf %66, %66 : vector<1x1x1xf32>
    %75 = arith.subf %73, %74 : vector<1x1x1xf32>
    %cst_42 = arith.constant 0.000000e+00 : f32
    %76 = vector.broadcast %cst_42 : f32 to vector<1x1x1xf32>
    %77 = arith.maximumf %75, %76 : vector<1x1x1xf32>
    %78 = vector.broadcast %66 : vector<1x1x1xf32> to vector<1x8x16xf32>
    %79 = arith.subf %60, %78 : vector<1x8x16xf32>
    %cst_43 = arith.constant 9.99999974E-6 : f32
    %80 = vector.broadcast %cst_43 : f32 to vector<1x1x1xf32>
    %81 = arith.addf %77, %80 : vector<1x1x1xf32>
    %82 = math.rsqrt %81 : vector<1x1x1xf32>
    %83 = vector.broadcast %82 : vector<1x1x1xf32> to vector<1x8x16xf32>
    %84 = arith.mulf %79, %83 : vector<1x8x16xf32>
    %c0_44 = arith.constant 0 : index
    %c0_45 = arith.constant 0 : index
    %85 = vector.load %arg8[%c0_44, %c0_45] : memref<8x16xf32, #tpu.memory_space<vmem>>, vector<8x16xf32>
    %86 = vector.shape_cast %85 : vector<8x16xf32> to vector<1x8x16xf32>
    %87 = arith.mulf %84, %86 : vector<1x8x16xf32>
    %c0_46 = arith.constant 0 : index
    %c0_47 = arith.constant 0 : index
    %88 = vector.load %arg9[%c0_46, %c0_47] : memref<8x16xf32, #tpu.memory_space<vmem>>, vector<8x16xf32>
    %89 = vector.shape_cast %88 : vector<8x16xf32> to vector<1x8x16xf32>
    %90 = arith.addf %87, %89 : vector<1x8x16xf32>
    %91 = vector.shape_cast %90 : vector<1x8x16xf32> to vector<8x16xf32>
    %92 = arith.truncf %91 : vector<8x16xf32> to vector<8x16xbf16>
    %c0_48 = arith.constant 0 : index
    %c0_49 = arith.constant 0 : index
    %93 = vector.load %arg10[%c0_48, %c0_49] : memref<16x32xbf16, #tpu.memory_space<vmem>>, vector<16x32xbf16>
    %cst_50 = arith.constant dense<0.000000e+00> : vector<8x32xf32>
    %94 = tpu.matmul %92, %93, %cst_50 {dimension_numbers = #tpu.dot_dimension_numbers<[1], [0], [0], [1], [0, 0, 1, 1], [], []>} : vector<8x16xbf16>, vector<16x32xbf16>, vector<8x32xf32> -> vector<8x32xf32>
    %c0_51 = arith.constant 0 : index
    %c0_52 = arith.constant 0 : index
    %95 = vector.load %arg11[%c0_51, %c0_52] : memref<1x32xf32, #tpu.memory_space<vmem>>, vector<1x32xf32>
    %96 = vector.broadcast %95 : vector<1x32xf32> to vector<8x32xf32>
    %97 = arith.addf %94, %96 : vector<8x32xf32>
    %cst_53 = arith.constant 5.000000e-01 : f32
    %98 = vector.broadcast %cst_53 : f32 to vector<8x32xf32>
    %99 = arith.mulf %98, %97 : vector<8x32xf32>
    %cst_54 = arith.constant 2.000000e+00 : f32
    %100 = math.sqrt %cst_54 : f32
    %cst_55 = arith.constant 1.000000e+00 : f32
    %101 = arith.divf %cst_55, %100 : f32
    %102 = vector.broadcast %101 : f32 to vector<8x32xf32>
    %103 = arith.mulf %97, %102 : vector<8x32xf32>
    %104 = math.erf %103 : vector<8x32xf32>
    %cst_56 = arith.constant 1.000000e+00 : f32
    %105 = vector.broadcast %cst_56 : f32 to vector<8x32xf32>
    %106 = arith.addf %105, %104 : vector<8x32xf32>
    %107 = arith.mulf %99, %106 : vector<8x32xf32>
    %108 = arith.truncf %107 : vector<8x32xf32> to vector<8x32xbf16>
    %c0_57 = arith.constant 0 : index
    %c0_58 = arith.constant 0 : index
    %109 = vector.load %arg12[%c0_57, %c0_58] : memref<32x16xbf16, #tpu.memory_space<vmem>>, vector<32x16xbf16>
    %cst_59 = arith.constant dense<0.000000e+00> : vector<8x16xf32>
    %110 = tpu.matmul %108, %109, %cst_59 {dimension_numbers = #tpu.dot_dimension_numbers<[1], [0], [0], [1], [0, 0, 1, 1], [], []>} : vector<8x32xbf16>, vector<32x16xbf16>, vector<8x16xf32> -> vector<8x16xf32>
    %c0_60 = arith.constant 0 : index
    %c0_61 = arith.constant 0 : index
    %111 = vector.load %arg13[%c0_60, %c0_61] : memref<1x16xf32, #tpu.memory_space<vmem>>, vector<1x16xf32>
    %112 = vector.broadcast %111 : vector<1x16xf32> to vector<8x16xf32>
    %113 = arith.addf %110, %112 : vector<8x16xf32>
    %114 = vector.shape_cast %113 : vector<8x16xf32> to vector<1x8x16xf32>
    %c0_62 = arith.constant 0 : index
    %c0_63 = arith.constant 0 : index
    %c0_64 = arith.constant 0 : index
    %115 = vector.load %arg14[%c0_62, %c0_63, %c0_64] : memref<1x8x16xf32, #tpu.memory_space<vmem>>, vector<1x8x16xf32>
    %116 = arith.addf %114, %115 : vector<1x8x16xf32>
    %c0_65 = arith.constant 0 : index
    %c0_66 = arith.constant 0 : index
    %c0_67 = arith.constant 0 : index
    %117 = vector.load %arg14[%c0_65, %c0_66, %c0_67] : memref<1x8x16xf32, #tpu.memory_space<vmem>>, vector<1x8x16xf32>
    tpu.vector_store %arg14[%c0_65, %c0_66, %c0_67], %116 {strides = array<i32>} : memref<1x8x16xf32, #tpu.memory_space<vmem>>, vector<1x8x16xf32>,
    return
  }
  func.func @transform_0(%arg0: i32) -> (i32, i32, i32) {
    %c0_i32 = arith.constant 0 : i32
    %c0_i32_0 = arith.constant 0 : i32
    %c0_i32_1 = arith.constant 0 : i32
    return %arg0, %c0_i32, %c0_i32_0 : i32, i32, i32
  }
  func.func @transform_1(%arg0: i32) -> (i32, i32) {
    %c0_i32 = arith.constant 0 : i32
    %c0_i32_0 = arith.constant 0 : i32
    %c0_i32_1 = arith.constant 0 : i32
    return %c0_i32, %c0_i32_0 : i32, i32
  }
  func.func @transform_2(%arg0: i32) -> (i32, i32) {
    %c0_i32 = arith.constant 0 : i32
    %c0_i32_0 = arith.constant 0 : i32
    %c0_i32_1 = arith.constant 0 : i32
    return %c0_i32, %c0_i32_0 : i32, i32
  }
  func.func @transform_3(%arg0: i32) -> (i32, i32) {
    %c0_i32 = arith.constant 0 : i32
    %c0_i32_0 = arith.constant 0 : i32
    %c0_i32_1 = arith.constant 0 : i32
    return %c0_i32, %c0_i32_0 : i32, i32
  }
  func.func @transform_4(%arg0: i32) -> (i32, i32) {
    %c0_i32 = arith.constant 0 : i32
    %c0_i32_0 = arith.constant 0 : i32
    %c0_i32_1 = arith.constant 0 : i32
    return %c0_i32, %c0_i32_0 : i32, i32
  }
  func.func @transform_5(%arg0: i32) -> (i32, i32) {
    %c0_i32 = arith.constant 0 : i32
    %c0_i32_0 = arith.constant 0 : i32
    %c0_i32_1 = arith.constant 0 : i32
    return %c0_i32, %c0_i32_0 : i32, i32
  }
  func.func @transform_6(%arg0: i32) -> (i32, i32) {
    %c0_i32 = arith.constant 0 : i32
    %c0_i32_0 = arith.constant 0 : i32
    %c0_i32_1 = arith.constant 0 : i32
    return %c0_i32, %c0_i32_0 : i32, i32
  }
  func.func @transform_7(%arg0: i32) -> (i32, i32) {
    %c0_i32 = arith.constant 0 : i32
    %c0_i32_0 = arith.constant 0 : i32
    %c0_i32_1 = arith.constant 0 : i32
    return %c0_i32, %c0_i32_0 : i32, i32
  }
  func.func @transform_8(%arg0: i32) -> (i32, i32) {
    %c0_i32 = arith.constant 0 : i32
    %c0_i32_0 = arith.constant 0 : i32
    %c0_i32_1 = arith.constant 0 : i32
    return %c0_i32, %c0_i32_0 : i32, i32
  }
  func.func @transform_9(%arg0: i32) -> (i32, i32) {
    %c0_i32 = arith.constant 0 : i32
    %c0_i32_0 = arith.constant 0 : i32
    %c0_i32_1 = arith.constant 0 : i32
    return %c0_i32, %c0_i32_0 : i32, i32
  }
  func.func @transform_10(%arg0: i32) -> (i32, i32) {
    %c0_i32 = arith.constant 0 : i32
    %c0_i32_0 = arith.constant 0 : i32
    %c0_i32_1 = arith.constant 0 : i32
    return %c0_i32, %c0_i32_0 : i32, i32
  }
  func.func @transform_11(%arg0: i32) -> (i32, i32) {
    %c0_i32 = arith.constant 0 : i32
    %c0_i32_0 = arith.constant 0 : i32
    %c0_i32_1 = arith.constant 0 : i32
    return %c0_i32, %c0_i32_0 : i32, i32
  }
  func.func @transform_12(%arg0: i32) -> (i32, i32) {
    %c0_i32 = arith.constant 0 : i32
    %c0_i32_0 = arith.constant 0 : i32
    %c0_i32_1 = arith.constant 0 : i32
    return %c0_i32, %c0_i32_0 : i32, i32
  }
  func.func @transform_13(%arg0: i32) -> (i32, i32, i32) {
    %c0_i32 = arith.constant 0 : i32
    %c0_i32_0 = arith.constant 0 : i32
    %c0_i32_1 = arith.constant 0 : i32
    return %arg0, %c0_i32, %c0_i32_0 : i32, i32, i32
  }
}

</mosaic_0001>

<bundles_post_ra>
// kernel: tpu_custom_call.1
= control target key start
LH: loop header
LB: loop body
LE: loop exit
PB: predicated region body
PF: predicated region fallthrough
CT: control target
= control target key end

     0   :  { %s1378_s0 = inlined_call_operand.vmem [shape: f32[2,8,16], index: 0, kind: input, shape index: {}]   ;;  %s1379_s1 = inlined_call_operand.vmem [shape: f32[8,16], index: 1, kind: input, shape index: {}]   ;;  %s1380_s2 = inlined_call_operand.vmem [shape: f32[8,16], index: 2, kind: input, shape index: {}]   ;;  %s1381_s3 = inlined_call_operand.vmem [shape: bf16[8,32], index: 3, kind: input, shape index: {}]   ;;  %s1382_s4 = inlined_call_operand.vmem [shape: f32[32,1], index: 4, kind: input, shape index: {}]   ;;  %s1383_s5 = inlined_call_operand.vmem [shape: bf16[32,8], index: 5, kind: input, shape index: {}]   ;;  %s1384_s6 = inlined_call_operand.vmem [shape: f32[8,1], index: 6, kind: input, shape index: {}]   ;;  %s1385_s7 = inlined_call_operand.vmem [shape: f32[8,16], index: 7, kind: input, shape index: {}]   ;;  %s1386_s8 = inlined_call_operand.vmem [shape: f32[8,16], index: 8, kind: input, shape index: {}]   ;;  %s1387_s9 = inlined_call_operand.vmem [shape: bf16[16,32], index: 9, kind: input, shape index: {}]   ;;  %s1388_s10 = inlined_call_operand.vmem [shape: f32[1,32], index: 10, kind: input, shape index: {}]   ;;  %s1389_s11 = inlined_call_operand.vmem [shape: bf16[32,16], index: 11, kind: input, shape index: {}]   ;;  %s1390_s12 = inlined_call_operand.vmem [shape: f32[1,16], index: 12, kind: input, shape index: {}]   ;;  %s1391_s13 = inlined_call_operand.hbm [shape: f32[2,8,16], index: 13, kind: output, shape index: {}]  }
   0x1   :  { %1393 = sst [smem:[#allocation5_spill]] %s1378_s0 }
   0x2   :  { %1394 = sst [smem:[#allocation6_spill]] %s1379_s1 }
   0x3   :  { %18 = vsyncpa [#allocation3], 0 }
   0x4   :  { %20 = vsyncpa [#allocation3 + $0x1], 0  ;;  %s1181_s25 = smov 0   ;;  %s1183_s26 = smov 0  }
   0x5   :  { %s1185_s27 = smov 0   ;;  %s1187_s28 = smov 0  }
   0x6 LB: > { %s1202_s29 = sadd.s32 4294967295, %s1105_s28   ;;  %s918_s30 = sadd.s32 4294967294, %s1105_s28   ;;  %s1105_s28 = sphi %s1187_s28, %s1403_s28   ;;  %s1101_s27 = sphi %s1185_s27, %s1402_s27   ;;  %s1097_s26 = sphi %s1183_s26, %s1401_s26   ;;  %s1093_s25 = sphi %s1181_s25, %s1400_s25  }
   0x7   : > { %s1206_s14 = sadd.s32 1, %s1105_s28   ;;  %s311_s15 = sadd.s32 1, %s1101_s27 }
   0x8   : > { %s308_s16 = ssub.s32 %s1105_s28, %s1206_s14  ;;  %p321_p0 = scmp.ne.s32.totalorder %s1101_s27, %s1097_s26 }
   0x9   : > { %p309_p1 = scmp.eq.s32.totalorder %s308_s16, 0  ;;  %p322_p2 = scmp.eq.s32.totalorder %s1202_s29, 1 }
   0xa   : > { %p327_p3 = scmp.ne.s32.totalorder %s1097_s26, %s1093_s25  ;;  %p328_p4 = scmp.eq.s32.totalorder %s918_s30, 1 }
   0xb   : > { %s1217_s17 = scalar_select %p309_p1, %s1101_s27, %s311_s15  }
   0xc   : > { %p1219_p5 = por %p322_p2, %p321_p0  ;;  %p1223_p6 = por %p328_p4, %p327_p3 }
   0xd   : > { %p921_p7 = scmp.ge.s32.totalorder %s1105_s28, 1  ;;  %p389_p8 = scmp.lt.s32.totalorder %s1105_s28, 3 }
   0xf   : > { %p390_p9 = pnand %p921_p7, %p389_p8 }
  0x10   : > { %p432_p10 = scmp.lt.s32.totalorder (!%p390_p9), %s1202_s29, 1  ;;  %v472_v0 = vld [vmem:[%s1381_s3] sm:$0xf] (!%p390_p9)  ;;  %vm438_vm0 = vcmask (!%p390_p9), 130048   ;;  %s1397_s0 = sld [smem:[#allocation5_spill]] (!%p390_p9)  ;;  %v1107_v6 = vmov (!%p390_p9), 0  }
  0x11   : > { %393 = sbr.rel (%p390_p9) target bundleno = 1333 (0x535), region = 72  ;;  %502 = vxpose.xlu1.c.b16.start.end [1/1] (short) (narrow) (!%p390_p9), %v472_v0, 32  ;;  %v477_v5 = vld [vmem:[%s1382_s4] sm:$0xff] (!%p390_p9)  ;;  %1023 = vset.pattern.permute.xlu0 (!%p390_p9), %v1107_v6  ;;  %v478_v7 = vld [vmem:[%s1382_s4 + $0x8] sm:$0xff] (!%p390_p9)  ;;  %v479_v8 = vld [vmem:[%s1382_s4 + $0x10] sm:$0xff] (!%p390_p9)  ;;  %vm518_vm1 = vcmask (!%p390_p9), 64512  }
  0x12   : > { %v481_v9 = vld [vmem:[%s1384_s6] sm:$0xff] (!%p390_p9)  ;;  %v480_v10 = vld [vmem:[%s1382_s4 + $0x18] sm:$0xff] (!%p390_p9)  ;;  %v1025_v13 = vld [vmem:[%s1383_s5 + $0x8] sm:$0xff] (!%p390_p9)   ;;  %s1398_s1 = sld [smem:[#allocation6_spill]] (!%p390_p9)  ;;  %vm525_vm2 = vcmask (!%p390_p9), 1043456   ;;  %v1108_v44 = vmov (!%p390_p9), 0.0  }
  0x13   : > { %v1024_v12 = vld [vmem:[%s1383_s5] sm:$0xff] (!%p390_p9)   ;;  %957 = vmatprep.subr.bf16.mxu1 (!%p390_p9), %v1108_v44  ;;  %vm1109_vm3 = vmmov (!%p390_p9), 0   ;;  %vm633_vm4 = vcmask (!%p390_p9), 261120   ;;  %s1392_s21 = sand.u32 (!%p390_p9), 1, %s1097_s26   ;;  %s937_s24 = sshll.u32 (!%p390_p9), %s1202_s29, 7 }
  0x14   : > { %v469_v38 = vld [vmem:[%s1380_s2] sm:$0xff] (!%p390_p9)  ;;  %961 = vmatprep.mubr.msk.bf16.mxu1 (!%p390_p9), %vm1109_vm3, %v1108_v44  ;;  %s1332_s20 = scalar_lea.hbm (!%p390_p9), %s1391_s13, %s937_s24 }
  0x15   : > { %1022 = vset.pattern.permute.xlu1 (!%p390_p9), %v1107_v6 }
  0x18   : > { %s433_s22 = scalar_select %p432_p10, %s1202_s29, 1  ;;  %v467_v36 = vld [vmem:[%s1398_s1] sm:$0xff] }
  0x19   : > { %484 = vperm.xlu1 %1022, %v477_v5   ;;  %s1399_s29 = sand.u32 1, %s1097_s26  }
  0x1a   : > { %s923_s23 = sshll.u32 %s433_s22, 3  ;;  %s922_s22 = sshll.u32 %s1392_s21, 3 }
  0x1b   : > { %s435_s15 = scalar_lea.vmem %s1397_s0, %s923_s23  ;;  %s1289_s23 = scalar_lea.vmem [#allocation2], %s922_s22 }
  0x1c   : > { %v1237_v1 = vld [vmem:[%s435_s15] sm:$0xff]  ;;  %s859_s30 = sshll.u32 %s1289_s23, 4  ;;  %s846_s21 = scalar_lea.sflag [#allocation3], %s1399_s29  ;;  %s1334_s30 = int_to_ptr.vmem [resolvable:$true] %s859_s30 }
  0x1d   : > { %v439_v2 = vsel %vm438_vm0, %v1237_v1, 0.0  ;;  %v449_v3 = vmul.f32 %v1237_v1, %v1237_v1  ;;  %494 = vperm.xlu1 %1022, %v479_v8   ;;  %s1043_s22 = scalar_lea.vmem %s1334_s30, 128  ;;  %s1110_s0 = smov [#allocation2]  }
  0x1e   : > { %440 = vadd.xlane.f32.xlu0 %v439_v2  ;;  %p1044_p11 = scmp.ne.s32.totalorder %s1334_s30, %s1043_s22  ;;  %s1047_s1 = sshll.u32 %s1110_s0, 4  ;;  %s1048_s1 = int_to_ptr.vmem [resolvable:$false] %s1047_s1 }
  0x1f   : > { %v450_v4 = vsel %vm438_vm0, %v449_v3, 0.0  ;;  %s1049_s15 = scalar_lea.vmem %s1048_s1, 256  ;;  %p1050_p0 = scmp.lt.s32.totalorder %s1334_s30, %s1048_s1 }
  0x20   : > { %p1045_p12 = pnand %p1044_p11, %p1219_p5  ;;  %p1051_p1 = scmp.lt.s32.totalorder %s1049_s15, %s1043_s22 }
  0x21   : > { %499 = vperm.xlu1 %1022, %v480_v10  }
  0x22   : > { %451 = vadd.xlane.f32.xlu0 %v450_v4  ;;  %p1046_p13 = pneg %p1045_p12  ;;  %p1052_p2 = por %p1051_p1, %p1050_p0 }
  0x24   : > { %p1053_p3 = pnand %p1052_p2, %p1046_p13 }
  0x38   : > { %489 = vperm.xlu0 %1023, %v478_v7  }
  0x3c   : > { %602 = vperm.xlu0 %1023, %v481_v9  }
  0x44   : > { %617 = vxpose.xlu1.c.b16.start [1/2] (short) (narrow) %v1024_v12, 16 }
  0x48   : > { %618 = vxpose.xlu1.c.b16.end [2/2] (short) (narrow) %v1025_v13, 16 }
  0x77   : > { %v510_v11 = vpop.trf.xlu1 }
  0x78   : > { %953 = vmatprep.mubr.msk.bf16.mxu0 %vm518_vm1, %v510_v11 }
  0x7b   : > { %v511_v43 = vpop.trf.xlu1 }
  0x98   : > { %v485_v45 = vpop.permute.xlu1 %484 }
  0x9c   : > { %v495_v46 = vpop.permute.xlu1 %494 }
  0xa0   : > { %v500_v50 = vpop.permute.xlu1 %499 }
  0xab   : > { %v441_v14 = vpop.xlane.xlu0 %440 }
  0xac   : > { %v442_v15 = vrot.slane %v441_v14, 4 }
  0xae   : > { %v443_v16 = vadd.f32 %v442_v15, %v441_v14 }
  0xaf   : > { %v452_v17 = vpop.xlane.xlu0 %451 }
  0xb0   : > { %v444_v18 = vrot.slane %v443_v16, 2  ;;  %v453_v19 = vrot.slane %v452_v17, 4 }
  0xb2   : > { %v445_v20 = vadd.f32 %v444_v18, %v443_v16  ;;  %v454_v21 = vadd.f32 %v453_v19, %v452_v17  ;;  %v625_v16 = vpop.trf.xlu1 }
  0xb4   : > { %v446_v22 = vrot.slane %v445_v20, 1  ;;  %v455_v23 = vrot.slane %v454_v21, 2 }
  0xb6   : > { %v447_v24 = vadd.f32 %v446_v22, %v445_v20  ;;  %v456_v25 = vadd.f32 %v455_v23, %v454_v21 }
  0xb7   : > { %v490_v53 = vpop.permute.xlu0 %489 }
  0xb8   : > { %v448_v26 = vmul.f32 0.0078125, %v447_v24  ;;  %v457_v27 = vrot.slane %v456_v25, 1 }
  0xba   : > { %v458_v28 = vadd.f32 %v457_v27, %v456_v25  ;;  %v460_v29 = vmul.f32 %v448_v26, %v448_v26  ;;  %v463_v34 = vsub.f32 %v1237_v1, %v448_v26 }
  0xbb   : > { %v603_v17 = vpop.permute.xlu0 %602 }
  0xbc   : > { %v459_v30 = vmul.f32 0.0078125, %v458_v28 }
  0xbe   : > { %v461_v31 = vsub.f32 %v459_v30, %v460_v29 }
  0xc0   : > { %v462_v32 = vmax.f32 %v461_v31, 0.0 }
  0xc2   : > { %v464_v33 = vadd.f32 1e-05, %v462_v32 }
  0xc4   : > { %1029 = vrsqrt.f32 %v464_v33 }
  0xce   : > { %v1030_v35 = vpop.eup %1029 }
  0xcf   : > { %v466_v37 = vmul.f32 %v1030_v35, %v463_v34 }
  0xd1   : > { %v468_v39 = vmul.f32 %v467_v36, %v466_v37 }
  0xd3   : > { %v470_v40 = vadd.f32 %v469_v38, %v468_v39 }
  0xd5   : > { %v471_v41 = vpack.c.bf16 %v470_v40, %v470_v40 }
  0xd7   : > { %979 = vmatprep.subr.msk.bf16.mxu0 %vm525_vm2, %v471_v41  ;;  %v527_v42 = vsel %vm525_vm2, %v471_v41, 0 }
  0xd8   : > { %952 = vmatpush3.bf16.msra.mxu0 %v527_v42 }
  0xd9   : > { %965 = vmatprep.subr.bf16.mxu0 %v1108_v44 }
  0xdb   : > { %954 = vmatmul.mubr.msk.bf16.vlgmr.msra.gmra.mrb[0].mxu0 %vm518_vm1, %v511_v43 }
  0xdc   : > { %967 = vmatprep.mubr.msk.bf16.mxu0 %vm1109_vm3, %v1108_v44 }
 0x1ae   : > { %v955_v47 = vpop.f32.mrb[0].mxu0 }
 0x1af   : > { %v572_v48 = vadd.f32 %v955_v47, %v495_v46  ;;  %v563_v49 = vpop.f32.mrb[1].mxu0 }
 0x1b0   : > { %v564_v51 = vadd.f32 %v563_v49, %v485_v45  ;;  %v956_v52 = vpop.f32.mrb[2].mxu0 }
 0x1b1   : > { %v584_v54 = vmul.f32 0.70710677, %v572_v48  ;;  %v575_v55 = vadd.f32 %v956_v52, %v500_v50  ;;  %v566_v56 = vpop.f32.mrb[3].mxu0  ;;  %v580_v4 = vmul.f32 0.5, %v572_v48 }
 0x1b2   : > { %v582_v57 = vmul.f32 0.70710677, %v564_v51  ;;  %v567_v58 = vadd.f32 %v566_v56, %v490_v53  ;;  %v578_v7 = vmul.f32 0.5, %v564_v51  ;;  %v708_v51 = vld [vmem:[%s1385_s7] sm:$0xff] }
 0x1b3   : > { %1031 = verf.f32 %v584_v54  ;;  %v585_v59 = vmul.f32 0.70710677, %v575_v55  ;;  %v581_v5 = vmul.f32 0.5, %v575_v55  ;;  %v710_v53 = vld [vmem:[%s1386_s8] sm:$0xff] }
 0x1b4   : > { %1033 = verf.f32 %v582_v57  ;;  %v583_v60 = vmul.f32 0.70710677, %v567_v58  ;;  %v579_v8 = vmul.f32 0.5, %v567_v58  ;;  %v1027_v57 = vld [vmem:[%s1389_s11] sm:$0xff]   ;;  %v1028_v58 = vld [vmem:[%s1389_s11 + $0x8] sm:$0xff]  }
 0x1b5   : > { %1035 = verf.f32 %v585_v59  ;;  %v929_v59 = vld [vmem:[%s1388_s10] ss:$0 sm:$0xff] }
 0x1b6   : > { %1037 = verf.f32 %v583_v60 }
 0x1bd   : > { %v1032_v61 = vpop.eup %1031 }
 0x1be   : > { %v1034_v62 = vpop.eup %1033  ;;  %v592_v63 = vadd.f32 1.0, %v1032_v61 }
 0x1bf   : > { %v1036_v0 = vpop.eup %1035  ;;  %v590_v2 = vadd.f32 1.0, %v1034_v62 }
 0x1c0   : > { %v1038_v3 = vpop.eup %1037  ;;  %v593_v6 = vadd.f32 1.0, %v1036_v0  ;;  %v596_v10 = vmul.f32 %v592_v63, %v580_v4 }
 0x1c1   : > { %v591_v9 = vadd.f32 1.0, %v1038_v3  ;;  %v594_v12 = vmul.f32 %v590_v2, %v578_v7  ;;  %v932_v7 = vld [vmem:[%s1390_s12] ss:$0 sm:$0xff] }
 0x1c2   : > { %v597_v11 = vmul.f32 %v593_v6, %v581_v5 }
 0x1c3   : > { %v595_v13 = vmul.f32 %v591_v9, %v579_v8 }
 0x1c4   : > { %v599_v14 = vpack.c.bf16 %v597_v11, %v596_v10 }
 0x1c5   : > { %v598_v15 = vpack.c.bf16 %v595_v13, %v594_v12 }
 0x1c7   : > { %958 = vmatpush3.bf16.msra.mxu1 %v598_v15 }
 0x1c8   : > { %959 = vmatprep.subr.bf16.mxu1 %v1108_v44 }
 0x1cb   : > { %960 = vmatpush3.bf16.msra.mxu1 %v599_v14 }
 0x1cc   : > { %971 = vmatprep.subr.bf16.mxu1 %v1108_v44 }
 0x1ce   : > { %962 = vmatmul.mubr.msk.bf16.vlgmr.msra.gmra.mrb[0].mxu1 %vm633_vm4, %v625_v16 }
 0x1cf   : > { %975 = vmatprep.mubr.msk.bf16.mxu1 %vm1109_vm3, %v1108_v44  ;;  %972 = vmatpush3.bf16.msra.mxu1 %v1027_v57 }
 0x1d0   : > { %973 = vmatprep.subr.bf16.mxu1 %v1108_v44 }
 0x1d3   : > { %974 = vmatpush3.bf16.msra.mxu1 %v1028_v58 }
 0x2a1   : > { %v671_v18 = vpop.f32.mrb[0].mxu1 }
 0x2a2   : > { %v672_v19 = vadd.f32 %v671_v18, %v603_v17  ;;  %v963_v20 = vpop.f32.mrb[1].mxu1 }
 0x2a3   : > { %v674_v21 = vpop.f32.mrb[2].mxu1 }
 0x2a4   : > { %v677_v22 = vadd.f32 %v672_v19, %v1237_v1  ;;  %v964_v23 = vpop.f32.mrb[3].mxu1  ;;  %v1026_v1 = vld [vmem:[%s1387_s9] sm:$0xff]  }
 0x2a5   : > { %966 = vmatpush3.bf16.msra.mxu0 %v1026_v1 }
 0x2a6   : > { %678 = vst.msk [vmem:[%s1289_s23] sm:$0xff] %vm438_vm0, %v677_v22 }
 0x2ad   : > { %v1294_v24 = vld [vmem:[%s1289_s23] sm:$0xff] }
 0x2ae   : > { %v680_v25 = vsel %vm438_vm0, %v1294_v24, 0.0  ;;  %v690_v26 = vmul.f32 %v1294_v24, %v1294_v24 }
 0x2af   : > { %681 = vadd.xlane.f32.xlu0 %v680_v25 }
 0x2b0   : > { %v691_v27 = vsel %vm438_vm0, %v690_v26, 0.0 }
 0x2b1   : > { %692 = vadd.xlane.f32.xlu1 %v691_v27 }
 0x33c   : > { %v682_v28 = vpop.xlane.xlu0 %681 }
 0x33d   : > { %v683_v29 = vrot.slane %v682_v28, 4 }
 0x33e   : > { %v693_v30 = vpop.xlane.xlu1 %692 }
 0x33f   : > { %v684_v31 = vadd.f32 %v683_v29, %v682_v28  ;;  %v694_v32 = vrot.slane %v693_v30, 4 }
 0x341   : > { %v685_v33 = vrot.slane %v684_v31, 2  ;;  %v695_v34 = vadd.f32 %v694_v32, %v693_v30 }
 0x343   : > { %v686_v35 = vadd.f32 %v685_v33, %v684_v31  ;;  %v696_v36 = vrot.slane %v695_v34, 2 }
 0x345   : > { %v687_v37 = vrot.slane %v686_v35, 1  ;;  %v697_v38 = vadd.f32 %v696_v36, %v695_v34 }
 0x347   : > { %v688_v39 = vadd.f32 %v687_v37, %v686_v35  ;;  %v698_v40 = vrot.slane %v697_v38, 1 }
 0x349   : > { %v689_v41 = vmul.f32 0.0078125, %v688_v39  ;;  %v699_v42 = vadd.f32 %v698_v40, %v697_v38 }
 0x34b   : > { %v701_v43 = vmul.f32 %v689_v41, %v689_v41  ;;  %v700_v45 = vmul.f32 0.0078125, %v699_v42  ;;  %v704_v49 = vsub.f32 %v1294_v24, %v689_v41 }
 0x34d   : > { %v702_v46 = vsub.f32 %v700_v45, %v701_v43 }
 0x34f   : > { %v703_v47 = vmax.f32 %v702_v46, 0.0 }
 0x351   : > { %v705_v48 = vadd.f32 1e-05, %v703_v47 }
 0x353   : > { %1039 = vrsqrt.f32 %v705_v48 }
 0x35d   : > { %v1040_v50 = vpop.eup %1039 }
 0x35e   : > { %v707_v52 = vmul.f32 %v1040_v50, %v704_v49 }
 0x360   : > { %v709_v54 = vmul.f32 %v708_v51, %v707_v52 }
 0x362   : > { %v711_v55 = vadd.f32 %v710_v53, %v709_v54 }
 0x364   : > { %v712_v56 = vpack.c.bf16 %v711_v55, %v711_v55 }
 0x366   : > { %968 = vmatmul.mubr.msk.bf16.vlgmr.msra.gmra.mrb[4].mxu0 %vm438_vm0, %v712_v56 }
 0x439   : > { %v765_v60 = vpop.f32.mrb[4].mxu0 }
 0x43a   : > { %v766_v61 = vadd.f32 %v929_v59, %v765_v60  ;;  %v969_v62 = vpop.f32.mrb[5].mxu0 }
 0x43b   : > { %v768_v63 = vpop.f32.mrb[6].mxu0 }
 0x43c   : > { %v772_v0 = vmul.f32 0.70710677, %v766_v61  ;;  %v970_v2 = vpop.f32.mrb[7].mxu0  ;;  %v771_v44 = vmul.f32 0.5, %v766_v61 }
 0x43e   : > { %1041 = verf.f32 %v772_v0 }
 0x448   : > { %v1042_v3 = vpop.eup %1041 }
 0x449   : > { %v774_v4 = vadd.f32 1.0, %v1042_v3 }
 0x44b   : > { %v775_v5 = vmul.f32 %v774_v4, %v771_v44 }
 0x44d   : > { %v776_v6 = vpack.c.bf16 %v775_v5, %v775_v5 }
 0x44f   : > { %976 = vmatmul.mubr.msk.bf16.vlgmr.msra.gmra.mrb[4].mxu1 %vm633_vm4, %v776_v6 }
 0x522   : > { %v837_v8 = vpop.f32.mrb[4].mxu1 }
 0x523   : > { %v838_v9 = vadd.f32 %v932_v7, %v837_v8  ;;  %v977_v10 = vpop.f32.mrb[5].mxu1 }
 0x524   : > { %v840_v11 = vpop.f32.mrb[6].mxu1 }
 0x525   : > { %v843_v12 = vadd.f32 %v838_v9, %v1294_v24  ;;  %v978_v13 = vpop.f32.mrb[7].mxu1 }
 0x527   : > { %844 = vst.msk [vmem:[%s1289_s23] sm:$0xff] %vm438_vm0, %v843_v12 }
 0x528   : > { %1056 = shalt.err (!%p1053_p3)
}
 0x529   : > { %s1057_s23 = scalar_lea.hbm %s1332_s20, 128  ;;  %s1061_s0 = scalar_lea.hbm %s1391_s13, 256 }
 0x52a   : > { %p1058_p4 = scmp.ne.s32.totalorder %s1332_s20, %s1057_s23  ;;  %p1062_p9 = scmp.lt.u32.totalorder %s1332_s20, %s1391_s13 }
 0x52b   : > { %p1063_p10 = scmp.lt.u32.totalorder %s1061_s0, %s1057_s23  ;;  %p1065_p12 = scmp.lt.u32.totalorder %s1057_s23, %s1332_s20 }
 0x52c   : > { %p1059_p7 = pnand %p1058_p4, %p1219_p5 }
 0x52d   : > { %p1064_p11 = por %p1063_p10, %p1062_p9 }
 0x52e   : > { %p1060_p8 = pneg %p1059_p7 }
 0x52f   : > { %p1066_p13 = por %p1065_p12, %p1064_p11 }
 0x531   : > { %p1067_p0 = pnand %p1066_p13, %p1060_p8 }
 0x533   : > { %1070 = shalt.err (!%p1067_p0)
}
 0x534   : > { %980 = dma.vmem_to_hbm [thread:$0]  (%p1219_p5), %s1334_s30, 128, %s1332_s20, %s846_s21  }
 0x535 PF: > { %p986_p1 = scmp.ge.s32.totalorder %s1105_s28, 2  ;;  %s871_s22 = sand.u32 1, %s1093_s25  }
 0x536   : > { %s872_s15 = scalar_lea.sflag [#allocation3], %s871_s22 }
 0x537   : > { %p983_p2 = pnand %p986_p1, %p1223_p6 }
 0x539   : > { %1088 = dma.done.wait (!%p983_p2), %s872_s15, 128  }
 0x53a   : > { %1090 = vsyncadd (!%p983_p2), %s872_s15, 4294967168  ;;  %p23_p3 = scmp.ge.s32.totalorder %s1206_s14, 4   ;;  %s1400_s25 = smov %s1097_s26 }
 0x53b   : > { %s1401_s26 = smov %s1101_s27  ;;  %s1402_s27 = smov %s1217_s17 }
 0x53c   : > { %s1403_s28 = smov %s1206_s14  ;;  %25 = sbr.rel (!%p23_p3) target bundleno = 6 (0x6), region = 107 }
 0x543   :  { %877 = vsyncpa [#allocation3], 1 }
 0x544   :  { %879 = vsyncpa [#allocation3 + $0x1], 1 }

</bundles_post_ra>
